<compile_context>
chip_gen: v5e
topology: v5e:2x2
jax: 0.10.0
libtpu: 0.0.40
codegen_flags: <defaults>
</compile_context>

<pallas_src>
import jax
import jax.numpy as jnp
from jax import lax
from jax.experimental import pallas as pl
from jax.experimental.pallas import tpu as pltpu

_EPS = 1e-8


def _make_kernel(B: int, TB: int):
    inv_b = 1.0 / float(B)
    eps2 = _EPS * _EPS

    def kernel(margins_ref, fwt_ref, rppg_ref, dom_ref, id_ref, out_ref, acc_ref):
        i = pl.program_id(0)

        @pl.when(i == 0)
        def _():
            acc_ref[0] = 0.0
            acc_ref[1] = 0.0
            acc_ref[2] = 0.0

        f = fwt_ref[...].astype(jnp.float32)
        # Shared fwt squared norm — computed once, reused by all three cosines.
        nf2 = jnp.sum(f * f, axis=1, keepdims=True)                  # (TB, 1)

        # Mask rows past the true batch size (partial last tile).
        row = i * TB + lax.broadcasted_iota(jnp.int32, (TB, 1), 0)
        valid = row < B

        def cos_sum(other_ref):
            o = other_ref[...].astype(jnp.float32)
            dot = jnp.sum(f * o, axis=1, keepdims=True)              # (TB, 1)
            no2 = jnp.sum(o * o, axis=1, keepdims=True)              # (TB, 1)
            # dot / max(|f||o|, eps) == dot * rsqrt(max(|f|^2 |o|^2, eps^2))
            cos = dot * lax.rsqrt(jnp.maximum(nf2 * no2, eps2))
            cos = jnp.where(valid, cos, 0.0)
            return jnp.sum(cos)

        acc_ref[0] += cos_sum(rppg_ref)
        acc_ref[1] += cos_sum(dom_ref)
        acc_ref[2] += cos_sum(id_ref)

        @pl.when(i == pl.num_programs(0) - 1)
        def _():
            r = acc_ref[0] * inv_b
            d = acc_ref[1] * inv_b
            idv = acc_ref[2] * inv_b
            m_dom = margins_ref[0]
            m_id = margins_ref[1]
            zero = jnp.float32(0.0)
            out_ref[0, 0] = (jnp.maximum(zero, d - r + m_dom)
                             + jnp.maximum(zero, idv - r + m_id))

    return kernel


def cos_margin_loss2(fwt_feat, rppg_feat, domain_feat, id_feat,
                     margin_rppg, margin_domain, margin_id, epoch=None,
                     block_rows=None):
    # Faithful to the PyTorch __init__, which (intentional-looking bug kept)
    # sets margin_domain = margin_id = margin_rppg.
    del margin_domain, margin_id, epoch
    B, D = fwt_feat.shape

    # Row tile: multiple of 8 (sublane) or the full batch.  512 rows of
    # D-float32 x 4 inputs x 2 pipeline buffers stays far under VMEM limits
    # on v5e/v6e/v7x while sitting near the HBM roofline for large B.
    if block_rows is not None:
        TB = int(block_rows)
    else:
        TB = B if B <= 512 else 512
    grid = pl.cdiv(B, TB)

    # Margins live in SMEM (scalar prefetch) so changing them never recompiles.
    margins = jnp.asarray([margin_rppg, margin_rppg], dtype=jnp.float32)

    kernel = _make_kernel(B, TB)

    out = pl.pallas_call(
        kernel,
        out_shape=jax.ShapeDtypeStruct((1, 1), jnp.float32),
        grid_spec=pltpu.PrefetchScalarGridSpec(
            num_scalar_prefetch=1,
            grid=(grid,),
            in_specs=[
                pl.BlockSpec((TB, D), lambda i, m: (i, 0)),
                pl.BlockSpec((TB, D), lambda i, m: (i, 0)),
                pl.BlockSpec((TB, D), lambda i, m: (i, 0)),
                pl.BlockSpec((TB, D), lambda i, m: (i, 0)),
            ],
            out_specs=pl.BlockSpec((1, 1), lambda i, m: (0, 0),
                                   memory_space=pltpu.SMEM),
            scratch_shapes=[pltpu.SMEM((3,), jnp.float32)],
        ),
        compiler_params=pltpu.CompilerParams(
            dimension_semantics=("arbitrary",)),
    )(margins, fwt_feat, rppg_feat, domain_feat, id_feat)
    return out[0, 0]


def _ref_loss(fwt, rppg, dom, idf, margin):
    def mean_cos(a, b):
        dot = jnp.sum(a * b, axis=1)
        na = jnp.sqrt(jnp.sum(a * a, axis=1))
        nb = jnp.sqrt(jnp.sum(b * b, axis=1))
        return jnp.mean(dot / jnp.maximum(na * nb, 1e-8))

    r = mean_cos(fwt, rppg)
    d = mean_cos(fwt, dom)
    i = mean_cos(fwt, idf)
    return jnp.maximum(0.0, d - r + margin) + jnp.maximum(0.0, i - r + margin)


if __name__ == "__main__":
    key = jax.random.PRNGKey(0)

    margin_rppg = 0.1
    margin_domain = 0.2   # ignored per PyTorch module (overwritten by margin_rppg)
    margin_id = 0.3       # ignored per PyTorch module (overwritten by margin_rppg)

    # Test 1: small batch, single tile (grid=1).
    k1, k2, k3, k4, key = jax.random.split(key, 5)
    B, D = 8, 128
    fwt = jax.random.normal(k1, (B, D), dtype=jnp.float32)
    rppg = jax.random.normal(k2, (B, D), dtype=jnp.float32)
    dom = jax.random.normal(k3, (B, D), dtype=jnp.float32)
    idf = jax.random.normal(k4, (B, D), dtype=jnp.float32)

    loss = cos_margin_loss2(fwt, rppg, dom, idf,
                            margin_rppg, margin_domain, margin_id, epoch=0)
    jax.block_until_ready(loss)
    ref = _ref_loss(fwt, rppg, dom, idf, margin_rppg)
    assert jnp.allclose(loss, ref, atol=1e-5, rtol=1e-4), (loss, ref)

    # Test 2: batch not divisible by the row tile -> exercises the tiled
    # accumulation path and the partial-tile row mask.
    k1, k2, k3, k4, key = jax.random.split(key, 5)
    B2, D2 = 20, 128
    fwt2 = jax.random.normal(k1, (B2, D2), dtype=jnp.float32)
    rppg2 = jax.random.normal(k2, (B2, D2), dtype=jnp.float32)
    dom2 = jax.random.normal(k3, (B2, D2), dtype=jnp.float32)
    idf2 = jax.random.normal(k4, (B2, D2), dtype=jnp.float32)

    loss2 = cos_margin_loss2(fwt2, rppg2, dom2, idf2,
                             margin_rppg, margin_domain, margin_id, epoch=0,
                             block_rows=8)
    jax.block_until_ready(loss2)
    ref2 = _ref_loss(fwt2, rppg2, dom2, idf2, margin_rppg)
    assert jnp.allclose(loss2, ref2, atol=1e-5, rtol=1e-4), (loss2, ref2)

    print("KERNEL_OK")
</pallas_src>

<mosaic_0001>
module attributes {stable_mosaic.version = 11 : i64} {
  func.func @kernel(%arg0: i32, %arg1: memref<2xf32, #tpu.memory_space<smem>>, %arg2: memref<8x128xf32, #tpu.memory_space<vmem>>, %arg3: memref<8x128xf32, #tpu.memory_space<vmem>>, %arg4: memref<8x128xf32, #tpu.memory_space<vmem>>, %arg5: memref<8x128xf32, #tpu.memory_space<vmem>>, %arg6: memref<1x1xf32, #tpu.memory_space<smem>>, %arg7: memref<3xf32, #tpu.memory_space<smem>>) attributes {dimension_semantics = [#tpu.dimension_semantics<arbitrary>], iteration_bounds = array<i64: 1>, scalar_prefetch = 1 : i64, scratch_operands = 1 : i64, tpu.core_type = #tpu.core_type<tc>, window_params = [{transform_indices = @transform_0, window_bounds = array<i64: 8, 128>}, {transform_indices = @transform_1, window_bounds = array<i64: 8, 128>}, {transform_indices = @transform_2, window_bounds = array<i64: 8, 128>}, {transform_indices = @transform_3, window_bounds = array<i64: 8, 128>}, {transform_indices = @transform_4, window_bounds = array<i64: 1, 1>}]} {
    %c0_i32 = arith.constant 0 : i32
    %0 = arith.cmpi eq, %arg0, %c0_i32 : i32
    %1 = arith.extui %0 : i1 to i32
    %c0_i32_0 = arith.constant 0 : i32
    %2 = arith.cmpi ne, %1, %c0_i32_0 : i32
    scf.if %2 {
      %cst_30 = arith.constant 0.000000e+00 : f32
      %c0_31 = arith.constant 0 : index
      %79 = memref.load %arg7[%c0_31] : memref<3xf32, #tpu.memory_space<smem>>
      memref.store %cst_30, %arg7[%c0_31] : memref<3xf32, #tpu.memory_space<smem>>
      %cst_32 = arith.constant 0.000000e+00 : f32
      %c1_33 = arith.constant 1 : index
      %80 = memref.load %arg7[%c1_33] : memref<3xf32, #tpu.memory_space<smem>>
      memref.store %cst_32, %arg7[%c1_33] : memref<3xf32, #tpu.memory_space<smem>>
      %cst_34 = arith.constant 0.000000e+00 : f32
      %c2_35 = arith.constant 2 : index
      %81 = memref.load %arg7[%c2_35] : memref<3xf32, #tpu.memory_space<smem>>
      memref.store %cst_34, %arg7[%c2_35] : memref<3xf32, #tpu.memory_space<smem>>
    } else {
    }
    %c0 = arith.constant 0 : index
    %c0_1 = arith.constant 0 : index
    %3 = vector.load %arg2[%c0, %c0_1] : memref<8x128xf32, #tpu.memory_space<vmem>>, vector<8x128xf32>
    %4 = arith.mulf %3, %3 : vector<8x128xf32>
    %cst = arith.constant dense<0.000000e+00> : vector<8xf32>
    %5 = vector.multi_reduction <add>, %4, %cst [1] : vector<8x128xf32> to vector<8xf32>
    %6 = vector.shape_cast %5 : vector<8xf32> to vector<8x1xf32>
    %c8_i32 = arith.constant 8 : i32
    %7 = arith.muli %arg0, %c8_i32 : i32
    %8 = tpu.iota {dimensions = array<i32: 0>} : vector<8x1xi32>
    %9 = vector.broadcast %7 : i32 to vector<8x1xi32>
    %10 = arith.addi %9, %8 : vector<8x1xi32>
    %c8_i32_2 = arith.constant 8 : i32
    %11 = vector.broadcast %c8_i32_2 : i32 to vector<8x1xi32>
    %12 = arith.cmpi slt, %10, %11 : vector<8x1xi32>
    %c0_3 = arith.constant 0 : index
    %13 = memref.load %arg7[%c0_3] : memref<3xf32, #tpu.memory_space<smem>>
    %c0_4 = arith.constant 0 : index
    %c0_5 = arith.constant 0 : index
    %14 = vector.load %arg3[%c0_4, %c0_5] : memref<8x128xf32, #tpu.memory_space<vmem>>, vector<8x128xf32>
    %15 = arith.mulf %3, %14 : vector<8x128xf32>
    %cst_6 = arith.constant dense<0.000000e+00> : vector<8xf32>
    %16 = vector.multi_reduction <add>, %15, %cst_6 [1] : vector<8x128xf32> to vector<8xf32>
    %17 = vector.shape_cast %16 : vector<8xf32> to vector<8x1xf32>
    %18 = arith.mulf %14, %14 : vector<8x128xf32>
    %cst_7 = arith.constant dense<0.000000e+00> : vector<8xf32>
    %19 = vector.multi_reduction <add>, %18, %cst_7 [1] : vector<8x128xf32> to vector<8xf32>
    %20 = vector.shape_cast %19 : vector<8xf32> to vector<8x1xf32>
    %21 = arith.mulf %6, %20 : vector<8x1xf32>
    %cst_8 = arith.constant 1.000000e-16 : f32
    %22 = vector.broadcast %cst_8 : f32 to vector<8x1xf32>
    %23 = arith.maximumf %21, %22 : vector<8x1xf32>
    %24 = math.rsqrt %23 : vector<8x1xf32>
    %25 = arith.mulf %17, %24 : vector<8x1xf32>
    %cst_9 = arith.constant 0.000000e+00 : f32
    %26 = vector.broadcast %cst_9 : f32 to vector<8x1xf32>
    %27 = arith.select %12, %25, %26 : vector<8x1xi1>, vector<8x1xf32>
    %28 = vector.shape_cast %27 : vector<8x1xf32> to vector<1x8x1xf32>
    %cst_10 = arith.constant dense<0.000000e+00> : vector<1xf32>
    %29 = vector.multi_reduction <add>, %28, %cst_10 [1, 2] : vector<1x8x1xf32> to vector<1xf32>
    %30 = vector.shape_cast %29 : vector<1xf32> to vector<1x1x1xf32>
    %31 = vector.extract %30[0, 0, 0] : f32 from vector<1x1x1xf32>
    %32 = arith.addf %13, %31 : f32
    %c0_11 = arith.constant 0 : index
    %33 = memref.load %arg7[%c0_11] : memref<3xf32, #tpu.memory_space<smem>>
    memref.store %32, %arg7[%c0_11] : memref<3xf32, #tpu.memory_space<smem>>
    %c1 = arith.constant 1 : index
    %34 = memref.load %arg7[%c1] : memref<3xf32, #tpu.memory_space<smem>>
    %c0_12 = arith.constant 0 : index
    %c0_13 = arith.constant 0 : index
    %35 = vector.load %arg4[%c0_12, %c0_13] : memref<8x128xf32, #tpu.memory_space<vmem>>, vector<8x128xf32>
    %36 = arith.mulf %3, %35 : vector<8x128xf32>
    %cst_14 = arith.constant dense<0.000000e+00> : vector<8xf32>
    %37 = vector.multi_reduction <add>, %36, %cst_14 [1] : vector<8x128xf32> to vector<8xf32>
    %38 = vector.shape_cast %37 : vector<8xf32> to vector<8x1xf32>
    %39 = arith.mulf %35, %35 : vector<8x128xf32>
    %cst_15 = arith.constant dense<0.000000e+00> : vector<8xf32>
    %40 = vector.multi_reduction <add>, %39, %cst_15 [1] : vector<8x128xf32> to vector<8xf32>
    %41 = vector.shape_cast %40 : vector<8xf32> to vector<8x1xf32>
    %42 = arith.mulf %6, %41 : vector<8x1xf32>
    %cst_16 = arith.constant 1.000000e-16 : f32
    %43 = vector.broadcast %cst_16 : f32 to vector<8x1xf32>
    %44 = arith.maximumf %42, %43 : vector<8x1xf32>
    %45 = math.rsqrt %44 : vector<8x1xf32>
    %46 = arith.mulf %38, %45 : vector<8x1xf32>
    %cst_17 = arith.constant 0.000000e+00 : f32
    %47 = vector.broadcast %cst_17 : f32 to vector<8x1xf32>
    %48 = arith.select %12, %46, %47 : vector<8x1xi1>, vector<8x1xf32>
    %49 = vector.shape_cast %48 : vector<8x1xf32> to vector<1x8x1xf32>
    %cst_18 = arith.constant dense<0.000000e+00> : vector<1xf32>
    %50 = vector.multi_reduction <add>, %49, %cst_18 [1, 2] : vector<1x8x1xf32> to vector<1xf32>
    %51 = vector.shape_cast %50 : vector<1xf32> to vector<1x1x1xf32>
    %52 = vector.extract %51[0, 0, 0] : f32 from vector<1x1x1xf32>
    %53 = arith.addf %34, %52 : f32
    %c1_19 = arith.constant 1 : index
    %54 = memref.load %arg7[%c1_19] : memref<3xf32, #tpu.memory_space<smem>>
    memref.store %53, %arg7[%c1_19] : memref<3xf32, #tpu.memory_space<smem>>
    %c2 = arith.constant 2 : index
    %55 = memref.load %arg7[%c2] : memref<3xf32, #tpu.memory_space<smem>>
    %c0_20 = arith.constant 0 : index
    %c0_21 = arith.constant 0 : index
    %56 = vector.load %arg5[%c0_20, %c0_21] : memref<8x128xf32, #tpu.memory_space<vmem>>, vector<8x128xf32>
    %57 = arith.mulf %3, %56 : vector<8x128xf32>
    %cst_22 = arith.constant dense<0.000000e+00> : vector<8xf32>
    %58 = vector.multi_reduction <add>, %57, %cst_22 [1] : vector<8x128xf32> to vector<8xf32>
    %59 = vector.shape_cast %58 : vector<8xf32> to vector<8x1xf32>
    %60 = arith.mulf %56, %56 : vector<8x128xf32>
    %cst_23 = arith.constant dense<0.000000e+00> : vector<8xf32>
    %61 = vector.multi_reduction <add>, %60, %cst_23 [1] : vector<8x128xf32> to vector<8xf32>
    %62 = vector.shape_cast %61 : vector<8xf32> to vector<8x1xf32>
    %63 = arith.mulf %6, %62 : vector<8x1xf32>
    %cst_24 = arith.constant 1.000000e-16 : f32
    %64 = vector.broadcast %cst_24 : f32 to vector<8x1xf32>
    %65 = arith.maximumf %63, %64 : vector<8x1xf32>
    %66 = math.rsqrt %65 : vector<8x1xf32>
    %67 = arith.mulf %59, %66 : vector<8x1xf32>
    %cst_25 = arith.constant 0.000000e+00 : f32
    %68 = vector.broadcast %cst_25 : f32 to vector<8x1xf32>
    %69 = arith.select %12, %67, %68 : vector<8x1xi1>, vector<8x1xf32>
    %70 = vector.shape_cast %69 : vector<8x1xf32> to vector<1x8x1xf32>
    %cst_26 = arith.constant dense<0.000000e+00> : vector<1xf32>
    %71 = vector.multi_reduction <add>, %70, %cst_26 [1, 2] : vector<1x8x1xf32> to vector<1xf32>
    %72 = vector.shape_cast %71 : vector<1xf32> to vector<1x1x1xf32>
    %73 = vector.extract %72[0, 0, 0] : f32 from vector<1x1x1xf32>
    %74 = arith.addf %55, %73 : f32
    %c2_27 = arith.constant 2 : index
    %75 = memref.load %arg7[%c2_27] : memref<3xf32, #tpu.memory_space<smem>>
    memref.store %74, %arg7[%c2_27] : memref<3xf32, #tpu.memory_space<smem>>
    %c0_i32_28 = arith.constant 0 : i32
    %76 = arith.cmpi eq, %arg0, %c0_i32_28 : i32
    %77 = arith.extui %76 : i1 to i32
    %c0_i32_29 = arith.constant 0 : i32
    %78 = arith.cmpi ne, %77, %c0_i32_29 : i32
    scf.if %78 {
      %c0_30 = arith.constant 0 : index
      %79 = memref.load %arg7[%c0_30] : memref<3xf32, #tpu.memory_space<smem>>
      %cst_31 = arith.constant 1.250000e-01 : f32
      %80 = arith.mulf %79, %cst_31 : f32
      %c1_32 = arith.constant 1 : index
      %81 = memref.load %arg7[%c1_32] : memref<3xf32, #tpu.memory_space<smem>>
      %cst_33 = arith.constant 1.250000e-01 : f32
      %82 = arith.mulf %81, %cst_33 : f32
      %c2_34 = arith.constant 2 : index
      %83 = memref.load %arg7[%c2_34] : memref<3xf32, #tpu.memory_space<smem>>
      %cst_35 = arith.constant 1.250000e-01 : f32
      %84 = arith.mulf %83, %cst_35 : f32
      %c0_36 = arith.constant 0 : index
      %85 = memref.load %arg1[%c0_36] : memref<2xf32, #tpu.memory_space<smem>>
      %c1_37 = arith.constant 1 : index
      %86 = memref.load %arg1[%c1_37] : memref<2xf32, #tpu.memory_space<smem>>
      %87 = arith.subf %82, %80 : f32
      %88 = arith.addf %87, %85 : f32
      %cst_38 = arith.constant 0.000000e+00 : f32
      %89 = arith.maximumf %cst_38, %88 : f32
      %90 = arith.subf %84, %80 : f32
      %91 = arith.addf %90, %86 : f32
      %cst_39 = arith.constant 0.000000e+00 : f32
      %92 = arith.maximumf %cst_39, %91 : f32
      %93 = arith.addf %89, %92 : f32
      %c0_40 = arith.constant 0 : index
      %c0_41 = arith.constant 0 : index
      %94 = memref.load %arg6[%c0_40, %c0_41] : memref<1x1xf32, #tpu.memory_space<smem>>
      memref.store %93, %arg6[%c0_40, %c0_41] : memref<1x1xf32, #tpu.memory_space<smem>>
    } else {
    }
    return
  }
  func.func @transform_0(%arg0: i32, %arg1: memref<2xf32, #tpu.memory_space<smem>>) -> (i32, i32) {
    %c0_i32 = arith.constant 0 : i32
    %c0_i32_0 = arith.constant 0 : i32
    return %arg0, %c0_i32 : i32, i32
  }
  func.func @transform_1(%arg0: i32, %arg1: memref<2xf32, #tpu.memory_space<smem>>) -> (i32, i32) {
    %c0_i32 = arith.constant 0 : i32
    %c0_i32_0 = arith.constant 0 : i32
    return %arg0, %c0_i32 : i32, i32
  }
  func.func @transform_2(%arg0: i32, %arg1: memref<2xf32, #tpu.memory_space<smem>>) -> (i32, i32) {
    %c0_i32 = arith.constant 0 : i32
    %c0_i32_0 = arith.constant 0 : i32
    return %arg0, %c0_i32 : i32, i32
  }
  func.func @transform_3(%arg0: i32, %arg1: memref<2xf32, #tpu.memory_space<smem>>) -> (i32, i32) {
    %c0_i32 = arith.constant 0 : i32
    %c0_i32_0 = arith.constant 0 : i32
    return %arg0, %c0_i32 : i32, i32
  }
  func.func @transform_4(%arg0: i32, %arg1: memref<2xf32, #tpu.memory_space<smem>>) -> (i32, i32) {
    %c0_i32 = arith.constant 0 : i32
    %c0_i32_0 = arith.constant 0 : i32
    %c0_i32_1 = arith.constant 0 : i32
    return %c0_i32, %c0_i32_0 : i32, i32
  }
}

</mosaic_0001>

<bundles_post_ra>
// kernel: tpu_custom_call.1
= control target key start
LH: loop header
LB: loop body
LE: loop exit
PB: predicated region body
PF: predicated region fallthrough
CT: control target
= control target key end

     0   :  { %s400_s21 = smov [#allocation4]   ;;  %s458_s0 = inlined_call_operand.hbm [shape: f32[2], index: 0, kind: input, shape index: {}]   ;;  %s459_s1 = inlined_call_operand.hbm [shape: f32[8,128], index: 1, kind: input, shape index: {}]   ;;  %s460_s2 = inlined_call_operand.hbm [shape: f32[8,128], index: 2, kind: input, shape index: {}]   ;;  %s461_s3 = inlined_call_operand.hbm [shape: f32[8,128], index: 3, kind: input, shape index: {}]   ;;  %s462_s4 = inlined_call_operand.hbm [shape: f32[8,128], index: 4, kind: input, shape index: {}]   ;;  %s463_s5 = inlined_call_operand.hbm [shape: f32[1,1], index: 5, kind: output, shape index: {}]  }
   0x1   :  { %s11_s20 = sshll.u32 %s458_s0, 4  ;;  %s12_s20 = int_to_ptr.hbm [resolvable:$true] %s11_s20 }
   0x2   :  { %14 = dma.hbm_to_smem %s12_s20, 16, %s400_s21, [#allocation3] }
   0x3   :  { %390 = dma.done.wait [#allocation3], 16 }
   0x4   :  { %391 = vsyncadd [#allocation3], 4294967280 }
   0x5   :  { %17 = sfence }
   0x6   :  { %18 = vsyncpa [#allocation6], 0 }
   0x7   :  { %19 = vsyncpa [#allocation9], 0 }
   0x8   :  { %20 = vsyncpa [#allocation12], 0  ;;  %s38_s24 = sshll.u32 %s460_s2, 4  ;;  %s39_s24 = int_to_ptr.hbm [resolvable:$true] %s38_s24 }
   0x9   :  { %21 = vsyncpa [#allocation7], 0  ;;  %s401_s25 = smov [#allocation8]   ;;  %s27_s28 = sshll.u32 %s459_s1, 4  ;;  %s28_s28 = int_to_ptr.hbm [resolvable:$true] %s27_s28 }
   0xa   :  { %s40_s26 = sshll.u32 %s401_s25, 4  ;;  %s402_s29 = smov [#allocation5]   ;;  %s41_s26 = int_to_ptr.vmem [resolvable:$true] %s40_s26 }
   0xb   :  { %43 = dma.hbm_to_vmem [thread:$0]  %s39_s24, 128, %s41_s26, [#allocation9]  }
   0xc   :  { %s29_s30 = sshll.u32 %s402_s29, 4  ;;  %s49_s8 = sshll.u32 %s461_s3, 4  ;;  %s30_s30 = int_to_ptr.vmem [resolvable:$true] %s29_s30  ;;  %s50_s8 = int_to_ptr.hbm [resolvable:$true] %s49_s8 }
   0xd   :  { %32 = dma.hbm_to_vmem [thread:$0]  %s28_s28, 128, %s30_s30, [#allocation6]  }
   0xe   :  { %s60_s10 = sshll.u32 %s462_s4, 4  ;;  %s403_s11 = smov [#allocation10]   ;;  %s61_s10 = int_to_ptr.hbm [resolvable:$true] %s60_s10 }
   0xf   :  { %s51_s12 = sshll.u32 %s403_s11, 4  ;;  %s404_s1 = smov [#allocation11]   ;;  %s52_s12 = int_to_ptr.vmem [resolvable:$true] %s51_s12 }
  0x10   :  { %54 = dma.hbm_to_vmem [thread:$0]  %s50_s8, 128, %s52_s12, [#allocation9]  }
  0x11   :  { %s62_s13 = sshll.u32 %s404_s1, 4  ;;  %s63_s13 = int_to_ptr.vmem [resolvable:$true] %s62_s13 }
  0x12   :  { %65 = dma.hbm_to_vmem [thread:$0]  %s61_s10, 128, %s63_s13, [#allocation12]  }
  0x13   :  { %392 = dma.done.wait [#allocation6], 128  }
  0x14   :  { %393 = vsyncadd [#allocation6], 4294967168 }
  0x15   :  { %394 = dma.done.wait [#allocation9], 256  }
  0x16   :  { %395 = vsyncadd [#allocation9], 4294967040 }
  0x17   :  { %396 = dma.done.wait [#allocation12], 128  }
  0x18   :  { %397 = vsyncadd [#allocation12], 4294967168  ;;  %v139_v0 = vld [vmem:[#allocation10] sm:$0xff]  ;;  %v92_v1 = vld [vmem:[#allocation5] sm:$0xff]  ;;  %vm124_vm3 = vcmask 7168   ;;  %s217_s3 = sld [smem:[#allocation4]] }
  0x19   :  { %v143_v2 = vmul.f32 %v139_v0, %v139_v0  ;;  %v93_v3 = vmul.f32 %v92_v1, %v92_v1  ;;  %v103_v4 = vld [vmem:[#allocation8] sm:$0xff]  ;;  %v174_v6 = vld [vmem:[#allocation11] sm:$0xff]  ;;  %v140_v9 = vmul.f32 %v139_v0, %v92_v1  ;;  %s250_s4 = sld [smem:[#allocation4 + $0x1]]  ;;  %s233_s25 = sshll.u32 %s463_s5, 4  ;;  %s234_s25 = int_to_ptr.hbm [resolvable:$true] %s233_s25 }
  0x1a   :  { %v104_v5 = vmul.f32 %v103_v4, %v92_v1  ;;  %v178_v7 = vmul.f32 %v174_v6, %v174_v6  ;;  %v107_v8 = vmul.f32 %v103_v4, %v103_v4  ;;  %v175_v10 = vmul.f32 %v174_v6, %v92_v1  ;;  %s405_s27 = smov 0.0   ;;  %s406_s30 = smov [#allocation13]  }
  0x1b   :  { %144 = vadd.xlane.f32.xlu1 %v143_v2  ;;  %94 = vadd.xlane.f32.xlu0 %v93_v3 }
  0x1c   :  { %105 = vadd.xlane.f32.xlu2 %v104_v5 }
  0x23   :  { %179 = vadd.xlane.f32.xlu1 %v178_v7  ;;  %108 = vadd.xlane.f32.xlu0 %v107_v8 }
  0x24   :  { %141 = vadd.xlane.f32.xlu2 %v140_v9 }
  0x2b   :  { %176 = vadd.xlane.f32.xlu0 %v175_v10 }
  0x8e   :  { %v145_v11 = vpop.xlane.xlu1 %144  ;;  %v95_v12 = vpop.xlane.xlu0 %94 }
  0x8f   :  { %v146_v13 = vmul.f32 %v145_v11, %v95_v12  ;;  %v106_v19 = vpop.xlane.xlu2 %105 }
  0x91   :  { %v147_v14 = vmax.f32 %v146_v13, 1e-16 }
  0x93   :  { %264 = vrsqrt.f32 %v147_v14  ;;  %vm154_vm1 = vweird.f32 %v147_v14 }
  0x96   :  { %v180_v15 = vpop.xlane.xlu1 %179  ;;  %v109_v16 = vpop.xlane.xlu0 %108 }
  0x97   :  { %v181_v17 = vmul.f32 %v180_v15, %v95_v12  ;;  %v110_v18 = vmul.f32 %v109_v16, %v95_v12  ;;  %v142_v30 = vpop.xlane.xlu2 %141 }
  0x99   :  { %v265_v20 = vpop.eup %264  ;;  %v182_v21 = vmax.f32 %v181_v17, 1e-16  ;;  %v111_v22 = vmax.f32 %v110_v18, 1e-16 }
  0x9a   :  { %v149_v23 = vmul.f32 %v265_v20, %v147_v14  ;;  %vm155_vm0 = vweird.f32 %v265_v20 }
  0x9b   :  { %266 = vrsqrt.f32 %v182_v21  ;;  %vm156_vm2 = vmor %vm154_vm1, %vm155_vm0  ;;  %vm189_vm6 = vweird.f32 %v182_v21  ;;  %vm118_vm7 = vweird.f32 %v111_v22 }
  0x9c   :  { %268 = vrsqrt.f32 %v111_v22  ;;  %v150_v24 = vmul.f32 %v265_v20, %v149_v23 }
  0x9e   :  { %v151_v25 = vmul.f32 0.5, %v150_v24  ;;  %v177_v43 = vpop.xlane.xlu0 %176 }
  0xa0   :  { %v152_v26 = vsub.f32 1.5, %v151_v25 }
  0xa1   :  { %v267_v27 = vpop.eup %266 }
  0xa2   :  { %v269_v28 = vpop.eup %268  ;;  %v184_v29 = vmul.f32 %v267_v27, %v182_v21  ;;  %v153_v31 = vmul.f32 %v265_v20, %v152_v26  ;;  %vm190_vm4 = vweird.f32 %v267_v27 }
  0xa3   :  { %v113_v32 = vmul.f32 %v269_v28, %v111_v22  ;;  %vm119_vm5 = vweird.f32 %v269_v28  ;;  %vm191_vm8 = vmor %vm189_vm6, %vm190_vm4 }
  0xa4   :  { %v185_v33 = vmul.f32 %v267_v27, %v184_v29  ;;  %v157_v34 = vsel %vm156_vm2, %v265_v20, %v153_v31  ;;  %vm120_vm9 = vmor %vm118_vm7, %vm119_vm5 }
  0xa5   :  { %v114_v35 = vmul.f32 %v269_v28, %v113_v32  ;;  %v158_v36 = vmul.f32 %v157_v34, %v142_v30 }
  0xa6   :  { %v186_v37 = vmul.f32 0.5, %v185_v33 }
  0xa7   :  { %v115_v38 = vmul.f32 0.5, %v114_v35  ;;  %v160_v39 = vsel %vm124_vm3, %v158_v36, 0.0 }
  0xa8   :  { %161 = vadd.xlane.f32.xlu2 %v160_v39  ;;  %v187_v40 = vsub.f32 1.5, %v186_v37 }
  0xa9   :  { %v116_v41 = vsub.f32 1.5, %v115_v38 }
  0xaa   :  { %v188_v42 = vmul.f32 %v267_v27, %v187_v40 }
  0xab   :  { %v117_v44 = vmul.f32 %v269_v28, %v116_v41 }
  0xac   :  { %v192_v45 = vsel %vm191_vm8, %v267_v27, %v188_v42 }
  0xad   :  { %v121_v46 = vsel %vm120_vm9, %v269_v28, %v117_v44  ;;  %v193_v47 = vmul.f32 %v192_v45, %v177_v43 }
  0xae   :  { %v122_v48 = vmul.f32 %v121_v46, %v106_v19 }
  0xaf   :  { %v195_v49 = vsel %vm124_vm3, %v193_v47, 0.0 }
  0xb0   :  { %v125_v50 = vsel %vm124_vm3, %v122_v48, 0.0  ;;  %196 = vadd.xlane.f32.xlu0 %v195_v49 }
  0xb1   :  { %126 = vadd.xlane.f32.xlu1 %v125_v50 }
 0x11b   :  { %v162_v51 = vpop.xlane.xlu2 %161 }
 0x11c   :  { %v163_v52 = vrot.slane %v162_v51, 4 }
 0x11e   :  { %v164_v53 = vadd.f32 %v163_v52, %v162_v51 }
 0x120   :  { %v165_v55 = vrot.slane %v164_v53, 2 }
 0x122   :  { %v166_v61 = vadd.f32 %v165_v55, %v164_v53 }
 0x123   :  { %v197_v54 = vpop.xlane.xlu0 %196 }
 0x124   :  { %v127_v56 = vpop.xlane.xlu1 %126  ;;  %v198_v57 = vrot.slane %v197_v54, 4  ;;  %v167_v2 = vrot.slane %v166_v61, 1 }
 0x125   :  { %v128_v58 = vrot.slane %v127_v56, 4 }
 0x126   :  { %v199_v59 = vadd.f32 %v198_v57, %v197_v54  ;;  %v168_v7 = vadd.f32 %v167_v2, %v166_v61 }
 0x127   :  { %v129_v60 = vadd.f32 %v128_v58, %v127_v56 }
 0x128   :  { %v200_v62 = vrot.slane %v199_v59, 2 }
 0x129   :  { %v130_v63 = vrot.slane %v129_v60, 2 }
 0x12a   :  { %v201_v0 = vadd.f32 %v200_v62, %v199_v59 }
 0x12b   :  { %v131_v1 = vadd.f32 %v130_v63, %v129_v60 }
 0x12c   :  { %v202_v3 = vrot.slane %v201_v0, 1 }
 0x12d   :  { %v132_v4 = vrot.slane %v131_v1, 1 }
 0x12e   :  { %v203_v6 = vadd.f32 %v202_v3, %v201_v0 }
 0x12f   :  { %v133_v5 = vadd.f32 %v132_v4, %v131_v1 }
 0x131   :  { %251 = vpush %v133_v5 }
 0x132   :  { %253 = vpush %v168_v7 }
 0x133   :  { %255 = vpush %v203_v6 }
 0x162   :  { %s252_s14 = spop %251 }
 0x163   :  { %s212_s15 = smul.f32 0.125, %s252_s14  ;;  %s254_s16 = spop %253 }
 0x164   :  { %s214_s17 = smul.f32 0.125, %s254_s16  ;;  %s256_s18 = spop %255 }
 0x165   :  { %s216_s19 = smul.f32 0.125, %s256_s18 }
 0x166   :  { %s219_s20 = ssub.f32 %s214_s17, %s212_s15 }
 0x167   :  { %s222_s21 = ssub.f32 %s216_s19, %s212_s15 }
 0x168   :  { %s220_s22 = sadd.f32 %s219_s20, %s217_s3 }
 0x169   :  { %s223_s26 = sadd.f32 %s250_s4, %s222_s21 }
 0x16a   :  { %s221_s0 = smax.f32 %s405_s27, %s220_s22 }
 0x16b   :  { %s224_s28 = smax.f32 %s405_s27, %s223_s26 }
 0x16c   :  { %s225_s29 = sadd.f32 %s224_s28, %s221_s0 }
 0x16e   :  { %227 = sst [smem:[#allocation13]] %s225_s29 }
 0x16f   :  { %236 = dma.smem_to_hbm %s406_s30, 16, %s234_s25, [#allocation7]  }
 0x170   :  { %398 = dma.done.wait [#allocation7], 16  }
 0x171   :  { %399 = vsyncadd [#allocation7], 4294967280 }
 0x172   :  { %241 = sfence }
 0x173   :  { %242 = vsyncpa [#allocation6], 1 }
 0x174   :  { %243 = vsyncpa [#allocation9], 1 }
 0x175   :  { %244 = vsyncpa [#allocation12], 1 }
 0x176   :  { %245 = vsyncpa [#allocation7], 1 }

</bundles_post_ra>
